<compile_context>
chip_gen: v7x
topology: tpu7x:2x2x1
jax: 0.10.0
libtpu: 0.0.40
codegen_flags: <defaults>
</compile_context>

<pallas_src>
import functools

import jax
import jax.numpy as jnp
from jax.experimental import pallas as pl
from jax.experimental.pallas import tpu as pltpu

NUM_CLASSES = 3
N_PAD = 128                 # lane-aligned padded output width for the MXU matmul
DEFAULT_BLOCK_BATCH = 512   # batch-tile size (rows per grid step)


def _round_up(x, m):
    return ((x + m - 1) // m) * m


def prepare_params(weight, bias):
    """One-time parameter prep (hoisted out of the per-call path).

    weight: [3, F] f32 (PyTorch nn.Linear layout), bias: [3] f32.
    Returns W pre-transposed / lane-padded to (F, 128) and bias padded to
    (1, 128) with -1e30 in the pad columns (so padded logits vanish in exp()).
    """
    f = weight.shape[1]
    w_p = (
        jnp.zeros((f, N_PAD), dtype=jnp.float32)
        .at[:, :NUM_CLASSES]
        .set(weight.T.astype(jnp.float32))
    )
    b_p = (
        jnp.full((1, N_PAD), -1e30, dtype=jnp.float32)
        .at[0, :NUM_CLASSES]
        .set(bias.astype(jnp.float32))
    )
    return w_p, b_p


def softmax_regression_kernel(x_ref, w_ref, b_ref, o_ref):
    # x_ref: (TB, F)  w_ref: (F, N_PAD)  b_ref: (1, N_PAD)  o_ref: (TB, NUM_CLASSES)
    x = x_ref[...]

    # Linear layer on the MXU with f32 accumulation. Padded W columns are zero
    # and padded bias columns are -1e30, so padded logits are ~-1e30 and need
    # no explicit mask before the softmax.
    logits = jnp.dot(x, w_ref[...], preferred_element_type=jnp.float32) + b_ref[...]

    # Numerically-stable softmax over the class axis.  Padded lanes contribute
    # exp(-huge) == 0 to the sum, so the 128-lane reduction equals the 3-class
    # reduction.  Exact divide keeps row sums == 1 (the approx reciprocal did not).
    m = jnp.max(logits, axis=-1, keepdims=True)
    e = jnp.exp(logits - m)
    s = jnp.sum(e, axis=-1, keepdims=True)
    prob = e / s

    o_ref[...] = prob[:, :NUM_CLASSES].astype(o_ref.dtype)


@functools.partial(jax.jit, static_argnames=("block_batch",))
def softmax_regression(x, w_padded, b_padded, *, block_batch=DEFAULT_BLOCK_BATCH):
    """x: [B, F] f32; w_padded/b_padded from prepare_params()."""
    B, F = x.shape

    # Batch tile: multiple of 8 sublanes, capped by block_batch.
    TB = min(block_batch, _round_up(B, 8))
    B_pad = _round_up(B, TB)
    if B_pad != B:
        x = jnp.pad(x, ((0, B_pad - B), (0, 0)))

    grid = (B_pad // TB,)

    # VMEM budget: double-buffered x + resident params + double-buffered output
    # + headroom for the (TB, N_PAD) logits/exp temporaries. Clamped so it is
    # safe on v7x's smaller physical VMEM as well as v5e/v6e.
    vmem_bytes = (
        2 * TB * F * 4
        + 2 * F * N_PAD * 4
        + 2 * N_PAD * 4
        + 2 * TB * NUM_CLASSES * 4
        + 4 * TB * N_PAD * 4
    )
    vmem_limit = int(min(max(2 * vmem_bytes, 2 << 20), 32 << 20))

    cost = pl.CostEstimate(
        flops=2 * B_pad * F * N_PAD,
        transcendentals=B_pad * N_PAD,
        bytes_accessed=B_pad * F * 4 + F * N_PAD * 4 + N_PAD * 4
        + B_pad * NUM_CLASSES * 4,
    )

    out = pl.pallas_call(
        softmax_regression_kernel,
        out_shape=jax.ShapeDtypeStruct((B_pad, NUM_CLASSES), x.dtype),
        grid=grid,
        in_specs=[
            pl.BlockSpec((TB, F), lambda i: (i, 0)),        # streams per grid step
            pl.BlockSpec((F, N_PAD), lambda i: (0, 0)),     # constant block (W)
            pl.BlockSpec((1, N_PAD), lambda i: (0, 0)),     # constant block (b)
        ],
        out_specs=pl.BlockSpec((TB, NUM_CLASSES), lambda i: (i, 0)),
        compiler_params=pltpu.CompilerParams(
            dimension_semantics=("parallel",),
            vmem_limit_bytes=vmem_limit,
        ),
        cost_estimate=cost,
    )(x, w_padded, b_padded)

    return out[:B]


if __name__ == "__main__":
    key = jax.random.PRNGKey(0)
    k_x, k_w, k_b = jax.random.split(key, 3)

    batch = 8
    num_features = 32

    x = jax.random.normal(k_x, (batch, num_features), dtype=jnp.float32)

    # Deterministic nn.Linear-style init: U(-1/sqrt(F), 1/sqrt(F)).
    bound = 1.0 / (num_features ** 0.5)
    weight = jax.random.uniform(
        k_w, (NUM_CLASSES, num_features), minval=-bound, maxval=bound, dtype=jnp.float32
    )
    bias = jax.random.uniform(
        k_b, (NUM_CLASSES,), minval=-bound, maxval=bound, dtype=jnp.float32
    )

    # Parameters padded once (outside the per-call path).
    w_p, b_p = prepare_params(weight, bias)

    prob = softmax_regression(x, w_p, b_p)
    prob = jax.block_until_ready(prob)

    # Reference check in plain JAX.
    ref_logits = x @ weight.T + bias
    ref_prob = jax.nn.softmax(ref_logits, axis=-1)
    assert prob.shape == (batch, NUM_CLASSES)
    assert jnp.allclose(prob, ref_prob, atol=1e-5, rtol=1e-5)
    assert jnp.allclose(jnp.sum(prob, axis=-1), 1.0, atol=1e-5)

    print("KERNEL_OK")
</pallas_src>

<mosaic_0001>
module attributes {stable_mosaic.version = 11 : i64} {
  func.func @softmax_regression_kernel(%arg0: i32, %arg1: memref<8x32xf32, #tpu.memory_space<vmem>>, %arg2: memref<32x128xf32, #tpu.memory_space<vmem>>, %arg3: memref<1x128xf32, #tpu.memory_space<vmem>>, %arg4: memref<8x3xf32, #tpu.memory_space<vmem>>) attributes {dimension_semantics = [#tpu.dimension_semantics<parallel>], iteration_bounds = array<i64: 1>, scalar_prefetch = 0 : i64, scratch_operands = 0 : i64, tpu.core_type = #tpu.core_type<tc>, window_params = [{transform_indices = @transform_0, window_bounds = array<i64: 8, 32>}, {pipeline_mode = #tpu.pipeline_mode<synchronous>, transform_indices = @transform_1, window_bounds = array<i64: 32, 128>}, {pipeline_mode = #tpu.pipeline_mode<synchronous>, transform_indices = @transform_2, window_bounds = array<i64: 1, 128>}, {transform_indices = @transform_3, window_bounds = array<i64: 8, 3>}]} {
    %c0 = arith.constant 0 : index
    %c0_0 = arith.constant 0 : index
    %0 = vector.load %arg1[%c0, %c0_0] : memref<8x32xf32, #tpu.memory_space<vmem>>, vector<8x32xf32>
    %c0_1 = arith.constant 0 : index
    %c0_2 = arith.constant 0 : index
    %1 = vector.load %arg2[%c0_1, %c0_2] : memref<32x128xf32, #tpu.memory_space<vmem>>, vector<32x128xf32>
    %cst = arith.constant dense<0.000000e+00> : vector<8x128xf32>
    %2 = tpu.matmul %0, %1, %cst {dimension_numbers = #tpu.dot_dimension_numbers<[1], [0], [0], [1], [0, 0, 1, 1], [], []>} : vector<8x32xf32>, vector<32x128xf32>, vector<8x128xf32> -> vector<8x128xf32>
    %c0_3 = arith.constant 0 : index
    %c0_4 = arith.constant 0 : index
    %3 = vector.load %arg3[%c0_3, %c0_4] : memref<1x128xf32, #tpu.memory_space<vmem>>, vector<1x128xf32>
    %4 = vector.broadcast %3 : vector<1x128xf32> to vector<8x128xf32>
    %5 = arith.addf %2, %4 : vector<8x128xf32>
    %cst_5 = arith.constant dense<0xFF800000> : vector<8xf32>
    %6 = vector.multi_reduction <maximumf>, %5, %cst_5 [1] : vector<8x128xf32> to vector<8xf32>
    %7 = vector.shape_cast %6 : vector<8xf32> to vector<8x1xf32>
    %8 = vector.broadcast %7 : vector<8x1xf32> to vector<8x128xf32>
    %9 = arith.subf %5, %8 : vector<8x128xf32>
    %10 = math.exp %9 : vector<8x128xf32>
    %cst_6 = arith.constant dense<0.000000e+00> : vector<8xf32>
    %11 = vector.multi_reduction <add>, %10, %cst_6 [1] : vector<8x128xf32> to vector<8xf32>
    %12 = vector.shape_cast %11 : vector<8xf32> to vector<8x1xf32>
    %13 = vector.broadcast %12 : vector<8x1xf32> to vector<8x128xf32>
    %14 = arith.divf %10, %13 : vector<8x128xf32>
    %15 = vector.extract_strided_slice %14 {offsets = [0, 0], sizes = [8, 3], strides = [1, 1]} : vector<8x128xf32> to vector<8x3xf32>
    %c0_7 = arith.constant 0 : index
    %c0_8 = arith.constant 0 : index
    %16 = vector.load %arg4[%c0_7, %c0_8] : memref<8x3xf32, #tpu.memory_space<vmem>>, vector<8x3xf32>
    tpu.vector_store %arg4[%c0_7, %c0_8], %15 {strides = array<i32>} : memref<8x3xf32, #tpu.memory_space<vmem>>, vector<8x3xf32>,
    return
  }
  func.func @transform_0(%arg0: i32) -> (i32, i32) {
    %c0_i32 = arith.constant 0 : i32
    %c0_i32_0 = arith.constant 0 : i32
    return %arg0, %c0_i32 : i32, i32
  }
  func.func @transform_1(%arg0: i32) -> (i32, i32) {
    %c0_i32 = arith.constant 0 : i32
    %c0_i32_0 = arith.constant 0 : i32
    %c0_i32_1 = arith.constant 0 : i32
    return %c0_i32, %c0_i32_0 : i32, i32
  }
  func.func @transform_2(%arg0: i32) -> (i32, i32) {
    %c0_i32 = arith.constant 0 : i32
    %c0_i32_0 = arith.constant 0 : i32
    %c0_i32_1 = arith.constant 0 : i32
    return %c0_i32, %c0_i32_0 : i32, i32
  }
  func.func @transform_3(%arg0: i32) -> (i32, i32) {
    %c0_i32 = arith.constant 0 : i32
    %c0_i32_0 = arith.constant 0 : i32
    return %arg0, %c0_i32 : i32, i32
  }
}

</mosaic_0001>

<bundles_post_ra>
// kernel: softmax_regression.1
= control target key start
LH: loop header
LB: loop body
LE: loop exit
PB: predicated region body
PF: predicated region fallthrough
CT: control target
= control target key end

     0   :  { %8 = vsyncpa [#allocation3], 0  ;;  %s290_s0 = inlined_call_operand.hbm [shape: f32[8,32], index: 0, kind: input, shape index: {}]   ;;  %s291_s1 = inlined_call_operand.hbm [shape: f32[32,128], index: 1, kind: input, shape index: {}]   ;;  %s292_s2 = inlined_call_operand.vmem [shape: f32[1,128], index: 2, kind: input, shape index: {}]   ;;  %s293_s3 = inlined_call_operand.vmem [shape: f32[8,3], index: 3, kind: output, shape index: {}]  }
   0x1   :  { %9 = vsyncpa [#allocation5], 0  ;;  %s226_s12 = smov [#allocation2]   ;;  %s227_s14 = smov [#allocation4]  }
   0x2   :  { %s16_s13 = sshll.u32 %s226_s12, 4  ;;  %s25_s15 = sshll.u32 %s227_s14, 4  ;;  %s17_s13 = int_to_ptr.vmem [resolvable:$true] %s16_s13  ;;  %s253_s15 = int_to_ptr.vmem [resolvable:$true] %s25_s15 }
   0x3   :  { %s178_s18 = scalar_lea.hbm %s290_s0, 128 }
   0x4   :  { %p179_p0 = scmp.ne.s32.totalorder %s290_s0, %s178_s18  ;;  %p182_p1 = scmp.lt.u32.totalorder %s178_s18, %s290_s0 }
   0x6   :  { %p184_p2 = pnand %p182_p1, %p179_p0 }
   0x8   :  { %187 = shalt.err (!%p184_p2)
}
   0x9   :  { %s188_s23 = scalar_lea.vmem %s17_s13, 128  ;;  %p193_p4 = scmp.lt.s32.totalorder %s17_s13, %s17_s13 }
   0xa   :  { %p189_p3 = scmp.ne.s32.totalorder %s17_s13, %s188_s23  ;;  %p194_p5 = scmp.lt.s32.totalorder %s188_s23, %s188_s23 }
   0xc   :  { %p195_p6 = por %p194_p5, %p193_p4 }
   0xe   :  { %p196_p7 = pnand %p195_p6, %p189_p3 }
  0x10   :  { %199 = shalt.err (!%p196_p7)
}
  0x11   :  { %19 = dma.hbm_to_vmem [thread:$0]  %s290_s0, 128, %s17_s13, [#allocation3]  }
  0x12   :  { %s200_s28 = scalar_lea.hbm %s291_s1, 512 }
  0x13   :  { %p201_p8 = scmp.ne.s32.totalorder %s291_s1, %s200_s28  ;;  %p204_p9 = scmp.lt.u32.totalorder %s200_s28, %s291_s1 }
  0x15   :  { %p206_p10 = pnand %p204_p9, %p201_p8 }
  0x17   :  { %209 = shalt.err (!%p206_p10)
}
  0x18   :  { %s210_s6 = scalar_lea.vmem %s253_s15, 512  ;;  %p215_p12 = scmp.lt.s32.totalorder %s253_s15, %s253_s15 }
  0x19   :  { %p211_p11 = scmp.ne.s32.totalorder %s253_s15, %s210_s6  ;;  %p216_p13 = scmp.lt.s32.totalorder %s210_s6, %s210_s6 }
  0x1b   :  { %p217_p0 = por %p216_p13, %p215_p12 }
  0x1d   :  { %p218_p1 = pnand %p217_p0, %p211_p11 }
  0x1f   :  { %221 = shalt.err (!%p218_p1)
}
  0x20   :  { %s228_s0 = smov 128   ;;  %s229_s7 = smov 8  }
  0x21   :  { %31 = dma.hbm_to_vmem [thread:$0]  %s291_s1, 512, %s253_s15, [#allocation5], %s228_s0, %s228_s0, %s229_s7  }
  0x22   :  { %222 = dma.done.wait [#allocation3], 128  }
  0x23   :  { %223 = vsyncadd [#allocation3], 4294967168 }
  0x24   :  { %224 = dma.done.wait [#allocation5], 512  }
  0x25   :  { %225 = vsyncadd [#allocation5], 4294966784  ;;  %v230_v0 = vmov 0.0|0.0   ;;  %vm231_vm0 = vmmov 0   ;;  %v232_v1 = vmov 0.0   ;;  %v41_v2 = vld [vmem:[#allocation4] sm:$0xff] }
  0x26   :  { %161 = vmatprep.subr.bf16.mxu0 %v230_v0  ;;  %158 = vmatprep.mubr.msk.f32.mxu0 %vm231_vm0, %v232_v1  ;;  %v42_v3 = vld [vmem:[#allocation4 + $0x8] sm:$0xff]  ;;  %v43_v4 = vld [vmem:[#allocation4 + $0x10] sm:$0xff]  ;;  %v44_v6 = vld [vmem:[#allocation4 + $0x18] sm:$0xff]  ;;  %vm52_vm1 = vcmask 261120   ;;  %vm135_vm2 = vcmask 23552  }
  0x27   :  { %v162_v5 = vpack.c.bf16 %v42_v3, %v41_v2  ;;  %v165_v7 = vpack.c.bf16 %v44_v6, %v43_v4  ;;  %v40_v8 = vld [vmem:[#allocation2] sm:$0xff]  ;;  %v143_v9 = vld [vmem:[%s292_s2] ss:$0 sm:$0xff] }
  0x29   :  { %163 = vmatpush3.bf16.msra.mxu0 %v162_v5 }
  0x2a   :  { %164 = vmatprep.subr.bf16.mxu0 %v230_v0 }
  0x2d   :  { %166 = vmatpush3.bf16.msra.mxu0 %v165_v7 }
  0x30   :  { %159 = vmatmul.mubr.msk.f32.vlgmr.msra.gmra.mrb[0].mxu0 %vm52_vm1, %v40_v8 }
 0x103   :  { %v122_v10 = vpop.f32.mrb[0].mxu0 }
 0x104   :  { %v123_v11 = vadd.f32 %v143_v9, %v122_v10  ;;  %v160_v12 = vpop.f32.mrb[1].mxu0 }
 0x106   :  { %126 = vmax.xlane.f32.xlu0 %v123_v11 }
 0x193   :  { %v127_v13 = vpop.xlane.xlu0 %126 }
 0x194   :  { %v128_v14 = vsub.f32 %v123_v11, %v127_v13 }
 0x196   :  { %v129_v15 = vmul.f32 1.442695, %v128_v14 }
 0x198   :  { %174 = vpow2.f32 %v129_v15 }
 0x1a2   :  { %v175_v16 = vpop.eup %174 }
 0x1a3   :  { %131 = vadd.xlane.f32.xlu0 %v175_v16 }
 0x230   :  { %v132_v17 = vpop.xlane.xlu0 %131 }
 0x231   :  { %176 = vrcp.f32 %v132_v17 }
 0x23b   :  { %v177_v18 = vpop.eup %176 }
 0x23c   :  { %v134_v19 = vmul.f32 %v177_v18, %v175_v16 }
 0x23e   :  { %136 = vst.msk [vmem:[%s293_s3] sm:$0xff] %vm135_vm2, %v134_v19 }
 0x23f   :  { %141 = vsyncpa [#allocation3], 1 }
 0x240   :  { %142 = vsyncpa [#allocation5], 1 }

</bundles_post_ra>
